<compile_context>
chip_gen: v5e
topology: v5e:2x2
jax: 0.10.0
libtpu: 0.0.40
codegen_flags: <defaults>
</compile_context>

<pallas_src>
import functools

import jax
import jax.numpy as jnp
import numpy as np
from jax import lax
from jax.experimental import pallas as pl
from jax.experimental.pallas import tpu as pltpu


def _split_hw(hw_idx, W):
    """h = hw // W, w = hw % W for 0 <= hw < H*W (< 2^22), static W."""
    if (W & (W - 1)) == 0:                       # power-of-two width
        shift = W.bit_length() - 1
        h = hw_idx >> shift
        w = hw_idx & (W - 1)
    else:
        # Exact constant-divisor division via f32 reciprocal:
        # floor((hw + 0.5) * (1/W)) == hw // W  for hw < 2^22, W <= 4096.
        inv_w = np.float32(1.0) / np.float32(W)
        h = jnp.floor((hw_idx.astype(jnp.float32) + 0.5) * inv_w).astype(jnp.int32)
        w = hw_idx - h * W
    return h, w


def cutmix_kernel(mode, W, lane_stride, chunk_lanes,            # static params
                  perm_ref, start_ref, size_ref,                # scalar prefetch (SMEM)
                  x_ref, x_other_ref,                           # inputs (VMEM blocks)
                  x_out_ref):                                   # output
    del perm_ref  # only used by the index_maps (data-dependent block fetch)
    i = pl.program_id(0)
    s = start_ref[i]
    e = s + size_ref[i]

    # Channel-independent (h, w) indices at channel-broadcast shape.
    if mode == "fold":                            # block (1, C, 8, chunk_lanes)
        _, _, S, Lc = x_ref.shape
        sub = lax.broadcasted_iota(jnp.int32, (1, 1, S, Lc), 2)
        lane = lax.broadcasted_iota(jnp.int32, (1, 1, S, Lc), 3)
        hw = sub * lane_stride + pl.program_id(1) * chunk_lanes + lane
        h_idx, w_idx = _split_hw(hw, W)
    elif mode == "flat":                          # block (1, C, HW)
        _, _, HW = x_ref.shape
        hw = lax.broadcasted_iota(jnp.int32, (1, 1, HW), 2)
        h_idx, w_idx = _split_hw(hw, W)
    else:                                         # "nchw": block (1, C, H, W)
        _, _, Hb, Wb = x_ref.shape
        h_idx = lax.broadcasted_iota(jnp.int32, (1, 1, Hb, Wb), 2)
        w_idx = lax.broadcasted_iota(jnp.int32, (1, 1, Hb, Wb), 3)

    mask = (h_idx >= s) & (h_idx < e) & (w_idx >= s) & (w_idx < e)

    # Paste the square region from the mix candidate, keep the rest.
    # Both branches stay in the input dtype (no implicit f32 upcast).
    x_out_ref[...] = jnp.where(mask, x_other_ref[...], x_ref[...])


def cutmix_forward(x, labels, lambda_val, start_idx_vals, perm,
                   *, max_block_bytes=2 * 1024 * 1024):
    """Training-mode CutMix forward. Returns (x2, mixed_labels)."""
    B, C, H, W = x.shape
    HW = H * W
    itemsize = jnp.dtype(x.dtype).itemsize

    # Scalar glue (matches the PyTorch int64-truncation semantics).
    lam = lambda_val.reshape(B).astype(jnp.float32)
    cut_sizes = (H * jnp.sqrt(1.0 - lam)).astype(jnp.int32)
    start_idxs = (start_idx_vals.reshape(B) * (H - cut_sizes)).astype(jnp.int32)
    perm = perm.reshape(B).astype(jnp.int32)

    # ---- choose an image layout (sublane/lane dense where possible) ----
    div_ok = ((W & (W - 1)) == 0) or (HW < (1 << 22))   # exactness bound of _split_hw
    if HW % (8 * 128) == 0 and div_ok:
        mode = "fold"
        lanes_full = HW // 8
        # Chunk the lane axis so one block stays <= max_block_bytes: keeps
        # double-buffered VMEM well under the scoped limit (incl. v7x 64 MiB).
        num_chunks = 1
        if C * 8 * lanes_full * itemsize > max_block_bytes:
            for k in range(2, lanes_full // 128 + 1):
                if (lanes_full % k == 0 and (lanes_full // k) % 128 == 0
                        and C * 8 * (lanes_full // k) * itemsize <= max_block_bytes):
                    num_chunks = k
                    break
        chunk_lanes = lanes_full // num_chunks
        lane_stride = lanes_full
        x_r = x.reshape(B, C, 8, lanes_full)
        block = (1, C, 8, chunk_lanes)
        idx_self = lambda i, j, pm, st, sz: (i, 0, 0, j)
        idx_other = lambda i, j, pm, st, sz: (pm[i], 0, 0, j)
    elif HW % 128 == 0 and div_ok:
        mode = "flat"
        num_chunks, chunk_lanes, lane_stride = 1, 0, 0
        x_r = x.reshape(B, C, HW)
        block = (1, C, HW)
        idx_self = lambda i, j, pm, st, sz: (i, 0, 0)
        idx_other = lambda i, j, pm, st, sz: (pm[i], 0, 0)
    else:
        mode = "nchw"
        num_chunks, chunk_lanes, lane_stride = 1, 0, 0
        x_r = x
        block = (1, C, H, W)
        idx_self = lambda i, j, pm, st, sz: (i, 0, 0, 0)
        idx_other = lambda i, j, pm, st, sz: (pm[i], 0, 0, 0)

    x_bytes = B * C * HW * itemsize
    cost = pl.CostEstimate(
        flops=6 * B * C * HW,         # iota / compare / select work
        transcendentals=0,
        bytes_accessed=3 * x_bytes,   # read x, read x[perm], write x2
    )

    grid_spec = pltpu.PrefetchScalarGridSpec(
        num_scalar_prefetch=3,        # perm, start_idxs, cut_sizes
        grid=(B, num_chunks),
        in_specs=[
            pl.BlockSpec(block, idx_self),    # x[i]
            pl.BlockSpec(block, idx_other),   # x[perm[i]] (data-dependent fetch)
        ],
        out_specs=pl.BlockSpec(block, idx_self),
    )

    x2_r = pl.pallas_call(
        functools.partial(cutmix_kernel, mode, W, lane_stride, chunk_lanes),
        grid_spec=grid_spec,
        out_shape=jax.ShapeDtypeStruct(x_r.shape, x.dtype),
        compiler_params=pltpu.CompilerParams(
            dimension_semantics=("parallel", "parallel")),  # fully independent blocks
        cost_estimate=cost,
    )(perm, start_idxs, cut_sizes, x_r, x_r)

    x2 = x2_r.reshape(B, C, H, W)

    # mixed_labels = lambda * labels + (1 - lambda) * labels[perm]
    # O(B*L): negligible bandwidth -> plain JAX (keeps 3 tiny padded DMA
    # streams out of the kernel pipeline, per perf review).
    lam2 = lam.reshape(B, 1)
    mixed = (lam2 * labels.astype(jnp.float32)
             + (1.0 - lam2) * labels[perm].astype(jnp.float32)).astype(labels.dtype)
    return x2, mixed


def cutmix_reference(x, labels, lambda_val, start_idx_vals, perm):
    """Pure-numpy reference mirroring the PyTorch loop."""
    x = np.asarray(x)
    labels = np.asarray(labels)
    lam = np.asarray(lambda_val).reshape(-1)
    sv = np.asarray(start_idx_vals).reshape(-1)
    perm = np.asarray(perm)
    B, C, H, W = x.shape
    cut = (H * np.sqrt(1.0 - lam)).astype(np.int64)
    start = (sv * (H - cut)).astype(np.int64)
    x2 = x.copy()
    for i in range(B):
        s = int(start[i]); e = s + int(cut[i])
        x2[i, :, s:e, s:e] = x[int(perm[i]), :, s:e, s:e]
    lam2 = lam.reshape(B, 1)
    mixed = lam2 * labels + (1.0 - lam2) * labels[perm]
    return x2, mixed.astype(labels.dtype)


if __name__ == "__main__":
    alpha = 1.0
    configs = [
        # (B, C, H, W, L, image dtype, max_block_bytes)
        (2, 3, 32, 32, 10, jnp.float32, None),        # fold path (HW % 1024 == 0)
        (2, 4, 16, 16, 8,  jnp.float32, None),        # flat path (HW % 128 == 0)
        (3, 3, 12, 12, 5,  jnp.float32, None),        # nchw fallback path
        (2, 3, 48, 48, 7,  jnp.float32, None),        # flat path, non-pow2 W (f32 div)
        (2, 3, 64, 64, 10, jnp.float32, 16 * 1024),   # fold path + lane chunking
        (2, 3, 32, 32, 10, jnp.bfloat16, None),       # native bf16 images
    ]
    for (B, C, H, W, L, img_dtype, mbb) in configs:
        key = jax.random.PRNGKey(0)
        kx, kl, kb, ks, kp = jax.random.split(key, 5)

        x = jax.random.normal(kx, (B, C, H, W), dtype=jnp.float32).astype(img_dtype)
        labels = jax.random.uniform(kl, (B, L), dtype=jnp.float32)
        # Deterministic in-script "sampling" of the module's random inputs
        # (Beta(alpha, alpha), uniform start offsets, random permutation).
        lambda_val = jax.random.beta(kb, alpha, alpha, (B,), dtype=jnp.float32)
        start_idx_vals = jax.random.uniform(ks, (B,), dtype=jnp.float32)
        perm = jax.random.permutation(kp, B)

        kwargs = {} if mbb is None else {"max_block_bytes": mbb}
        x2, mixed = cutmix_forward(x, labels, lambda_val, start_idx_vals, perm, **kwargs)
        jax.block_until_ready((x2, mixed))

        x2_ref, mixed_ref = cutmix_reference(
            np.asarray(x.astype(jnp.float32)), np.asarray(labels),
            np.asarray(lambda_val), np.asarray(start_idx_vals), np.asarray(perm))

        x2_np = np.asarray(x2.astype(jnp.float32))
        assert np.array_equal(x2_np, x2_ref), ("image mismatch", B, C, H, W, img_dtype)
        assert np.allclose(np.asarray(mixed), mixed_ref, atol=1e-5), \
            ("label mismatch", B, C, H, W, img_dtype)

    print("KERNEL_OK")
</pallas_src>

<mosaic_0001>
module attributes {stable_mosaic.version = 11 : i64} {
  func.func @cutmix_kernel(%arg0: i32, %arg1: i32, %arg2: memref<2xi32, #tpu.memory_space<smem>>, %arg3: memref<2xi32, #tpu.memory_space<smem>>, %arg4: memref<2xi32, #tpu.memory_space<smem>>, %arg5: memref<1x3x8x128xf32, #tpu.memory_space<vmem>>, %arg6: memref<1x3x8x128xf32, #tpu.memory_space<vmem>>, %arg7: memref<1x3x8x128xf32, #tpu.memory_space<vmem>>) attributes {dimension_semantics = [#tpu.dimension_semantics<parallel>, #tpu.dimension_semantics<parallel>], iteration_bounds = array<i64: 2, 1>, scalar_prefetch = 3 : i64, scratch_operands = 0 : i64, tpu.core_type = #tpu.core_type<tc>, window_params = [{transform_indices = @transform_0, window_bounds = array<i64: 1, 3, 8, 128>}, {transform_indices = @transform_1, window_bounds = array<i64: 1, 3, 8, 128>}, {transform_indices = @transform_2, window_bounds = array<i64: 1, 3, 8, 128>}]} {
    %0 = arith.index_cast %arg0 : i32 to index
    %1 = memref.load %arg3[%0] : memref<2xi32, #tpu.memory_space<smem>>
    %2 = arith.index_cast %arg0 : i32 to index
    %3 = memref.load %arg4[%2] : memref<2xi32, #tpu.memory_space<smem>>
    %4 = arith.addi %1, %3 : i32
    %5 = tpu.iota {dimensions = array<i32: 2>} : vector<1x1x8x128xi32>
    %6 = tpu.iota {dimensions = array<i32: 3>} : vector<1x1x8x128xi32>
    %c128_i32 = arith.constant 128 : i32
    %7 = vector.broadcast %c128_i32 : i32 to vector<1x1x8x128xi32>
    %8 = arith.muli %5, %7 : vector<1x1x8x128xi32>
    %c128_i32_0 = arith.constant 128 : i32
    %9 = arith.muli %arg1, %c128_i32_0 : i32
    %10 = vector.broadcast %9 : i32 to vector<1x1x8x128xi32>
    %11 = arith.addi %8, %10 : vector<1x1x8x128xi32>
    %12 = arith.addi %11, %6 : vector<1x1x8x128xi32>
    %c5_i32 = arith.constant 5 : i32
    %13 = vector.broadcast %c5_i32 : i32 to vector<1x1x8x128xi32>
    %14 = arith.shrsi %12, %13 : vector<1x1x8x128xi32>
    %c31_i32 = arith.constant 31 : i32
    %15 = vector.broadcast %c31_i32 : i32 to vector<1x1x8x128xi32>
    %16 = arith.andi %12, %15 : vector<1x1x8x128xi32>
    %17 = vector.broadcast %1 : i32 to vector<1x1x8x128xi32>
    %18 = arith.cmpi sge, %14, %17 : vector<1x1x8x128xi32>
    %19 = vector.broadcast %4 : i32 to vector<1x1x8x128xi32>
    %20 = arith.cmpi slt, %14, %19 : vector<1x1x8x128xi32>
    %21 = arith.andi %18, %20 : vector<1x1x8x128xi1>
    %22 = vector.broadcast %1 : i32 to vector<1x1x8x128xi32>
    %23 = arith.cmpi sge, %16, %22 : vector<1x1x8x128xi32>
    %24 = arith.andi %21, %23 : vector<1x1x8x128xi1>
    %25 = vector.broadcast %4 : i32 to vector<1x1x8x128xi32>
    %26 = arith.cmpi slt, %16, %25 : vector<1x1x8x128xi32>
    %27 = arith.andi %24, %26 : vector<1x1x8x128xi1>
    %c0 = arith.constant 0 : index
    %c0_1 = arith.constant 0 : index
    %c0_2 = arith.constant 0 : index
    %c0_3 = arith.constant 0 : index
    %28 = vector.load %arg6[%c0, %c0_1, %c0_2, %c0_3] : memref<1x3x8x128xf32, #tpu.memory_space<vmem>>, vector<1x3x8x128xf32>
    %c0_4 = arith.constant 0 : index
    %c0_5 = arith.constant 0 : index
    %c0_6 = arith.constant 0 : index
    %c0_7 = arith.constant 0 : index
    %29 = vector.load %arg5[%c0_4, %c0_5, %c0_6, %c0_7] : memref<1x3x8x128xf32, #tpu.memory_space<vmem>>, vector<1x3x8x128xf32>
    %30 = vector.shape_cast %27 : vector<1x1x8x128xi1> to vector<1x1x8x128xi1>
    %31 = vector.broadcast %30 : vector<1x1x8x128xi1> to vector<1x3x8x128xi1>
    %32 = arith.select %31, %28, %29 : vector<1x3x8x128xi1>, vector<1x3x8x128xf32>
    %c0_8 = arith.constant 0 : index
    %c0_9 = arith.constant 0 : index
    %c0_10 = arith.constant 0 : index
    %c0_11 = arith.constant 0 : index
    %33 = vector.load %arg7[%c0_8, %c0_9, %c0_10, %c0_11] : memref<1x3x8x128xf32, #tpu.memory_space<vmem>>, vector<1x3x8x128xf32>
    tpu.vector_store %arg7[%c0_8, %c0_9, %c0_10, %c0_11], %32 {strides = array<i32>} : memref<1x3x8x128xf32, #tpu.memory_space<vmem>>, vector<1x3x8x128xf32>,
    return
  }
  func.func @transform_0(%arg0: i32, %arg1: i32, %arg2: memref<2xi32, #tpu.memory_space<smem>>, %arg3: memref<2xi32, #tpu.memory_space<smem>>, %arg4: memref<2xi32, #tpu.memory_space<smem>>) -> (i32, i32, i32, i32) {
    %c0_i32 = arith.constant 0 : i32
    %c0_i32_0 = arith.constant 0 : i32
    %c0_i32_1 = arith.constant 0 : i32
    return %arg0, %c0_i32, %c0_i32_0, %arg1 : i32, i32, i32, i32
  }
  func.func @transform_1(%arg0: i32, %arg1: i32, %arg2: memref<2xi32, #tpu.memory_space<smem>>, %arg3: memref<2xi32, #tpu.memory_space<smem>>, %arg4: memref<2xi32, #tpu.memory_space<smem>>) -> (i32, i32, i32, i32) {
    %0 = arith.index_cast %arg0 : i32 to index
    %1 = memref.load %arg2[%0] : memref<2xi32, #tpu.memory_space<smem>>
    %c0_i32 = arith.constant 0 : i32
    %c0_i32_0 = arith.constant 0 : i32
    %c0_i32_1 = arith.constant 0 : i32
    return %1, %c0_i32, %c0_i32_0, %arg1 : i32, i32, i32, i32
  }
  func.func @transform_2(%arg0: i32, %arg1: i32, %arg2: memref<2xi32, #tpu.memory_space<smem>>, %arg3: memref<2xi32, #tpu.memory_space<smem>>, %arg4: memref<2xi32, #tpu.memory_space<smem>>) -> (i32, i32, i32, i32) {
    %c0_i32 = arith.constant 0 : i32
    %c0_i32_0 = arith.constant 0 : i32
    %c0_i32_1 = arith.constant 0 : i32
    return %arg0, %c0_i32, %c0_i32_0, %arg1 : i32, i32, i32, i32
  }
}

</mosaic_0001>

<bundles_post_ra>
// kernel: tpu_custom_call.1
= control target key start
LH: loop header
LB: loop body
LE: loop exit
PB: predicated region body
PF: predicated region fallthrough
CT: control target
= control target key end

     0   :  { %s744_s24 = smov [#allocation3]   ;;  %s745_s25 = smov [#allocation4]   ;;  %s1030_s0 = inlined_call_operand.hbm [shape: s32[2], index: 0, kind: input, shape index: {}]   ;;  %s1031_s3 = inlined_call_operand.hbm [shape: f32[2,3,8,128], index: 3, kind: input, shape index: {}]   ;;  %s1032_s4 = inlined_call_operand.hbm [shape: f32[2,3,8,128], index: 4, kind: input, shape index: {}]   ;;  %s1033_s5 = inlined_call_operand.hbm [shape: f32[2,3,8,128], index: 5, kind: output, shape index: {}]   ;;  %s1034_s1 = inlined_call_operand.hbm [shape: s32[2], index: 1, kind: input, shape index: {}]   ;;  %s1035_s2 = inlined_call_operand.vmem [shape: s32[2], index: 2, kind: input, shape index: {}]  }
   0x1   :  { %1041 = sst [smem:[#allocation21_spill]] %s1031_s3  ;;  %s11_s20 = sshll.u32 %s1030_s0, 4  ;;  %s12_s20 = int_to_ptr.hbm [resolvable:$true] %s11_s20 }
   0x2   :  { %s16_s23 = sshll.u32 %s1034_s1, 4  ;;  %s21_s28 = sshll.u32 %s1035_s2, 4  ;;  %s17_s23 = int_to_ptr.hbm [resolvable:$true] %s16_s23  ;;  %s22_s28 = int_to_ptr.vmem [resolvable:$true] %s21_s28 }
   0x3   :  { %14 = dma.hbm_to_smem %s12_s20, 16, %s744_s24, [#allocation2] }
   0x4   :  { %19 = dma.hbm_to_smem %s17_s23, 16, %s745_s25, [#allocation2] }
   0x5   :  { %s746_s29 = smov [#allocation5]  }
   0x6   :  { %24 = dma.vmem_to_smem %s22_s28, 16, %s746_s29, [#allocation2] }
   0x7   :  { %694 = dma.done.wait [#allocation2], 48 }
   0x8   :  { %695 = vsyncadd [#allocation2], 4294967248 }
   0x9   :  { %27 = sfence }
   0xa   :  { %28 = vsyncpa [#allocation7], 0 }
   0xb   :  { %30 = vsyncpa [#allocation7 + $0x1], 0 }
   0xc   :  { %31 = vsyncpa [#allocation10], 0 }
   0xd   :  { %33 = vsyncpa [#allocation10 + $0x1], 0 }
   0xe   :  { %34 = vsyncpa [#allocation8], 0 }
   0xf   :  { %36 = vsyncpa [#allocation8 + $0x1], 0  ;;  %s790_s0 = smov 0   ;;  %s792_s1 = smov 0  }
  0x10   :  { %s794_s30 = smov 0   ;;  %s796_s6 = smov 0  }
  0x11   :  { %s798_s2 = smov 0   ;;  %s800_s7 = smov 0  }
  0x12   :  { %s802_s8 = smov 0   ;;  %s804_s9 = smov 0  }
  0x13   :  { %s806_s10 = smov 0  }
  0x14 LB: > { %1042 = sst [smem:[#allocation18_spill]] %s738_s9  ;;  %s415_s11 = sadd.s32 4294967295, %s742_s10   ;;  %s742_s10 = sphi %s806_s10, %s42_s10   ;;  %s738_s9 = sphi %s804_s9, %s1062_s9   ;;  %s734_s8 = sphi %s802_s8, %s1061_s8   ;;  %s730_s7 = sphi %s800_s7, %s1068_s7   ;;  %s726_s2 = sphi %s798_s2, %s1067_s2   ;;  %s722_s6 = sphi %s796_s6, %s1066_s6   ;;  %s718_s30 = sphi %s794_s30, %s1065_s30   ;;  %s714_s1 = sphi %s792_s1, %s1064_s1   ;;  %s710_s0 = sphi %s790_s0, %s1063_s0  }
  0x15   : > { %s416_s12 = sadd.s32 4294967294, %s742_s10   ;;  %s54_s13 = sadd.s32 1, %s738_s9 }
  0x16   : > { %s63_s14 = sadd.s32 1, %s730_s7  ;;  %p56_p0 = scmp.ge.s32.totalorder %s54_s13, 2 }
  0x17   : > { %p70_p1 = scmp.ne.s32.totalorder %s730_s7, %s726_s2  ;;  %p71_p2 = scmp.eq.s32.totalorder %s742_s10, 0 }
  0x18   : > { %p76_p3 = scmp.ne.s32.totalorder %s726_s2, %s722_s6  ;;  %s1070_s13 = smov (%p56_p0, %s54_s13), 0 }
  0x19   : > { %1043 = sst [smem:[#allocation19_spill]] %s1070_s13  ;;  %p851_p4 = por %p71_p2, %p70_p1 }
  0x1a   : > { %p855_p5 = scmp.eq.s32.totalorder %s415_s11, 0  ;;  %s58_s17 = ssub.s32 %s738_s9, %s1070_s13 }
  0x1b   : > { %s862_s18 = sld [smem:[#allocation3 + %s738_s9]]  ;;  %p61_p6 = scmp.eq.s32.totalorder %s58_s17, 0 }
  0x1c   : > { %p869_p7 = por %p855_p5, %p76_p3  ;;  %s87_s20 = sld [smem:[#allocation3 + %s1070_s13]] }
  0x1d   : > { %p132_p8 = scmp.eq.s32.totalorder %s415_s11, 1  ;;  %p138_p10 = scmp.eq.s32.totalorder %s416_s12, 1 }
  0x1e   : > { %s875_s21 = scalar_select %p61_p6, %s730_s7, %s63_s14  }
  0x1f   : > { %p880_p9 = por %p132_p8, %p70_p1  ;;  %p1037_p12 = scmp.lt.s32.totalorder %s742_s10, 2 }
  0x20   : > { %1047 = sst [smem:[#allocation20_spill]] %s875_s21  ;;  %p889_p13 = por %p138_p10, %p76_p3 }
  0x21   : > { %s158_s24 = sand.u32 1, %s730_s7   ;;  %s426_s26 = smul.u32 24, %s738_s9 }
  0x22   : > { %s425_s25 = smul.u32 24, %s158_s24  ;;  %p441_p0 = pnand %p1037_p12, %p851_p4 }
  0x23   : > { %s1050_s3 = sld [smem:[#allocation21_spill]]  ;;  %p421_p1 = scmp.ge.s32.totalorder %s742_s10, 1 }
  0x24   : > { %s162_s11 = scalar_lea.vmem [#allocation6], %s425_s25  ;;  %s159_s15 = scalar_lea.sflag [#allocation7], %s158_s24 }
  0x25   : > { %s171_s12 = sshll.u32 %s162_s11, 4  ;;  %s1038_s17 = smov 128   ;;  %s172_s12 = int_to_ptr.vmem [resolvable:$true] %s171_s12 }
  0x26   : > { %s1039_s13 = smov 8   ;;  %p203_p3 = scmp.lt.s32.totalorder %s742_s10, 3 }
  0x27   : > { %s93_s27 = sadd.s32 1, %s718_s30  ;;  %p100_p8 = scmp.ne.s32.totalorder %s718_s30, %s714_s1 }
  0x28   : > { %p907_p4 = pnand %p421_p1, %p203_p3  ;;  %p106_p10 = scmp.ne.s32.totalorder %s714_s1, %s710_s0 }
  0x29   : > { %s168_s29 = scalar_lea.hbm %s1050_s3, %s426_s26  ;;  %s88_s26 = ssub.s32 %s862_s18, %s87_s20 }
  0x2a   : > { %s169_s14 = sshll.u32 %s168_s29, 4  ;;  %p91_p6 = scmp.eq.s32.totalorder %s88_s26, 0  ;;  %s170_s14 = int_to_ptr.hbm [resolvable:$true] %s169_s14 }
  0x2b   : > { %443 = dma.hbm_to_vmem [thread:$0]  (!%p441_p0), %s170_s14, 384, %s172_s12, %s159_s15, %s1038_s17, %s1038_s17, %s1039_s13  }
  0x2c   : > { %s181_s24 = sand.u32 1, %s718_s30   ;;  %p102_p11 = por %p100_p8, %p71_p2 }
  0x2d   : > { %s919_s28 = scalar_select %p91_p6, %s718_s30, %s93_s27  }
  0x2e   : > { %p925_p12 = por %p106_p10, %p855_p5  ;;  %s427_s12 = smul.u32 24, %s181_s24 }
  0x2f   : > { %s433_s11 = scalar_select %p102_p11, [#allocation3], [#allocation12] }
  0x30   : > { %p1053_p0 = scmp.lt.s32.totalorder %s742_s10, 2  ;;  %s185_s20 = scalar_lea.vmem [#allocation9], %s427_s12 }
  0x31   : > { %s434_s18 = scalar_select %p102_p11, %s738_s9, 0 }
  0x32   : > { %p931_p1 = pnand %p1053_p0, %p102_p11  ;;  %p1055_p3 = pmov %p1053_p0 }
  0x33   : > { %p1056_p6 = pmov %p1053_p0  ;;  %s195_s16 = sshll.u32 %s185_s20, 4  ;;  %s196_s16 = int_to_ptr.vmem [resolvable:$true] %s195_s16 }
  0x34   : > { %s1072_s11 = smov (!%p1055_p3, %s433_s11), [#allocation13]  ;;  %s182_s3 = scalar_lea.sflag [#allocation10], %s181_s24 }
  0x35   : > { %s1074_s18 = smov (!%p1056_p6, %s434_s18), 0  ;;  %p604_p5 = pneg %p931_p1 }
  0x36   : > { %s186_s0 = sld [smem:[%s1072_s11 + %s1074_s18]]  ;;  %s607_s18 = scalar_lea.hbm %s1032_s4, 48 }
  0x3c   : > { %s428_s15 = smul.u32 24, %s186_s0 }
  0x3e   : > { %s192_s17 = scalar_lea.hbm %s1032_s4, %s428_s15 }
  0x3f   : > { %s193_s13 = sshll.u32 %s192_s17, 4  ;;  %s194_s13 = int_to_ptr.hbm [resolvable:$true] %s193_s13 }
  0x40   : > { %s600_s21 = sshra.s32 %s194_s13, 4  ;;  %s601_s21 = int_to_ptr.hbm [resolvable:$true] %s600_s21 }
  0x41   : > { %s602_s9 = scalar_lea.hbm %s601_s21, 24  ;;  %p608_p10 = scmp.lt.s32.totalorder %s601_s21, %s1032_s4 }
  0x42   : > { %p603_p2 = scmp.ne.s32.totalorder %s601_s21, %s602_s9  ;;  %p609_p0 = scmp.lt.s32.totalorder %s607_s18, %s602_s9 }
  0x44   : > { %p605_p11 = pnand %p604_p5, %p603_p2  ;;  %p610_p3 = por %p609_p0, %p608_p10 }
  0x46   : > { %p606_p8 = pneg %p605_p11 }
  0x48   : > { %p611_p6 = pnand %p610_p3, %p606_p8 }
  0x4a   : > { %614 = shalt.err (!%p611_p6)
}
  0x4b   : > { %s1057_s17 = smov 8   ;;  %s1058_s24 = smov 128  }
  0x4c   : > { %448 = dma.hbm_to_vmem [thread:$0]  (!%p931_p1), %s194_s13, 384, %s196_s16, %s182_s3, %s1058_s24, %s1058_s24, %s1057_s17  }
  0x4d   : > { %207 = sbr.rel (%p907_p4) target bundleno = 109 (0x6d), region = 28  ;;  %s959_s15 = sand.u32 (!%p907_p4), 1, %s726_s2  }
  0x4e   : > { %s429_s9 = smul.u32 (!%p907_p4), 24, %s959_s15  ;;  %s210_s21 = scalar_lea.sflag (!%p907_p4), [#allocation7], %s959_s15 }
  0x50   : > { %s965_s26 = scalar_lea.vmem (!%p907_p4), [#allocation6], %s429_s9 }
  0x52   : > { %697 = dma.done.wait (%p869_p7), %s210_s21, 384  }
  0x53   : > { %699 = vsyncadd (%p869_p7), %s210_s21, 4294966912  ;;  %s219_s3 = sand.u32 1, %s714_s1  }
  0x54   : > { %s430_s13 = smul.u32 24, %s219_s3  ;;  %s220_s25 = scalar_lea.sflag [#allocation10], %s219_s3 }
  0x56   : > { %s223_s14 = scalar_lea.vmem [#allocation9], %s430_s13 }
  0x57   : > { %701 = dma.done.wait (%p925_p12), %s220_s25, 384  }
  0x58   : > { %703 = vsyncadd (%p925_p12), %s220_s25, 4294966912  ;;  %v254_v0 = vlaneseq  ;;  %s251_s16 = sld [smem:[#allocation4 + %s734_s8]]  ;;  %s431_s19 = smul.u32 24, %s734_s8  ;;  %v274_v9 = vld [vmem:[%s223_s14] sm:$0xff]  ;;  %v277_v10 = vld [vmem:[%s965_s26] sm:$0xff] }
  0x59   : > { %s252_s27 = sld [smem:[#allocation5 + %s734_s8]]  ;;  %v275_v11 = vld [vmem:[%s223_s14 + $0x8] sm:$0xff]  ;;  %v278_v12 = vld [vmem:[%s965_s26 + $0x8] sm:$0xff]  ;;  %s249_s8 = scalar_lea.vmem [#allocation11], %s429_s9  ;;  %v276_v13 = vld [vmem:[%s223_s14 + $0x10] sm:$0xff] }
  0x5a   : > { %v255_v1 = vshrl.u32 %v254_v0, 7  ;;  %v257_v2 = vand.u32 127, %v254_v0  ;;  %s301_s18 = scalar_lea.hbm %s1033_s5, %s431_s19  ;;  %s302_s0 = sshll.u32 %s249_s8, 4  ;;  %v279_v14 = vld [vmem:[%s965_s26 + $0x10] sm:$0xff]  ;;  %s303_s0 = int_to_ptr.vmem [resolvable:$true] %s302_s0 }
  0x5b   : > { %s304_s20 = sshll.u32 %s301_s18, 4  ;;  %s289_s17 = scalar_lea.sflag [#allocation8], %s959_s15  ;;  %s305_s20 = int_to_ptr.hbm [resolvable:$true] %s304_s20 }
  0x5c   : > { %v258_v3 = vmul.u32 128, %v255_v1  ;;  %s644_s24 = sshra.s32 %s305_s20, 4  ;;  %s650_s3 = scalar_lea.hbm %s1033_s5, 48  ;;  %s645_s24 = int_to_ptr.hbm [resolvable:$true] %s644_s24 }
  0x5d   : > { %s646_s21 = scalar_lea.hbm %s645_s24, 24  ;;  %p651_p1 = scmp.lt.s32.totalorder %s645_s24, %s1033_s5 }
  0x5e   : > { %v262_v4 = vadd.s32 %v258_v3, %v257_v2  ;;  %v265_v5 = vstv %s251_s16  ;;  %p647_p7 = scmp.ne.s32.totalorder %s645_s24, %s646_s21  ;;  %p652_p2 = scmp.lt.s32.totalorder %s650_s3, %s646_s21 }
  0x5f   : > { %s253_s11 = sadd.s32 %s252_s27, %s251_s16 }
  0x60   : > { %v263_v6 = vshra.s32 %v262_v4, 5  ;;  %v264_v7 = vand.u32 31, %v262_v4  ;;  %v267_v8 = vstv %s253_s11  ;;  %p648_p12 = pnand %p647_p7, %p880_p9  ;;  %p653_p5 = por %p652_p2, %p651_p1 }
  0x62   : > { %vm266_vm0 = vcmp.ge.s32.totalorder %v263_v6, %v265_v5  ;;  %vm268_vm1 = vcmp.lt.s32.totalorder %v263_v6, %v267_v8  ;;  %vm270_vm2 = vcmp.ge.s32.totalorder %v264_v7, %v265_v5  ;;  %vm272_vm3 = vcmp.lt.s32.totalorder %v264_v7, %v267_v8  ;;  %p649_p4 = pneg %p648_p12 }
  0x63   : > { %vm269_vm4 = vmand %vm266_vm0, %vm268_vm1 }
  0x64   : > { %vm271_vm5 = vmand %vm269_vm4, %vm270_vm2  ;;  %p654_p11 = pnand %p653_p5, %p649_p4 }
  0x65   : > { %vm273_vm6 = vmand %vm271_vm5, %vm272_vm3 }
  0x66   : > { %v282_v15 = vsel %vm273_vm6, %v274_v9, %v277_v10  ;;  %v283_v16 = vsel %vm273_vm6, %v275_v11, %v278_v12  ;;  %v284_v17 = vsel %vm273_vm6, %v276_v13, %v279_v14 }
  0x67   : > { %285 = vst [vmem:[%s249_s8] sm:$0xff] %v282_v15 }
  0x68   : > { %286 = vst [vmem:[%s249_s8 + $0x8] sm:$0xff] %v283_v16 }
  0x69   : > { %287 = vst [vmem:[%s249_s8 + $0x10] sm:$0xff] %v284_v17 }
  0x6a   : > { %657 = shalt.err (!%p654_p11)
}
  0x6b   : > { %s749_s15 = smov 128   ;;  %s750_s14 = smov 8  }
  0x6c   : > { %438 = dma.vmem_to_hbm [thread:$0]  (%p880_p9), %s303_s0, 384, %s305_s20, %s289_s17, %s749_s15, %s749_s15, %s750_s14  }
  0x6d PF: > { %s319_s16 = sand.u32 1, %s722_s6   ;;  %p1059_p8 = scmp.ge.s32.totalorder %s742_s10, 2 }
  0x6e   : > { %s320_s27 = scalar_lea.sflag [#allocation8], %s319_s16 }
  0x6f   : > { %p450_p10 = pnand %p1059_p8, %p889_p13 }
  0x71   : > { %p451_p0 = pneg %p450_p10 }
  0x73   : > { %705 = dma.done.wait (%p451_p0), %s320_s27, 384  }
  0x74   : > { %707 = vsyncadd (%p451_p0), %s320_s27, 4294966912  ;;  %s42_s10 = sadd.s32 1, %s742_s10   ;;  %s1060_s22 = sld [smem:[#allocation20_spill]] }
  0x75   : > { %p39_p3 = scmp.ge.s32.totalorder %s42_s10, 4   ;;  %s1061_s8 = sld [smem:[#allocation18_spill]] }
  0x76   : > { %s1062_s9 = sld [smem:[#allocation19_spill]]  ;;  %s1063_s0 = smov %s714_s1 }
  0x77   : > { %s1064_s1 = smov %s718_s30  ;;  %s1065_s30 = smov %s919_s28 }
  0x78   : > { %s1066_s6 = smov %s726_s2  ;;  %s1067_s2 = smov %s730_s7 }
  0x79   :  { %41 = sbr.rel (!%p39_p3) target bundleno = 20 (0x14), region = 86 }
  0x7a   : > { %s1068_s7 = smov %s1060_s22 }
  0x7e   :  { %326 = vsyncpa [#allocation7], 1 }
  0x7f   :  { %328 = vsyncpa [#allocation7 + $0x1], 1 }
  0x80   :  { %329 = vsyncpa [#allocation10], 1 }
  0x81   :  { %331 = vsyncpa [#allocation10 + $0x1], 1 }
  0x82   :  { %332 = vsyncpa [#allocation8], 1 }
  0x83   :  { %334 = vsyncpa [#allocation8 + $0x1], 1 }

</bundles_post_ra>
